<compile_context>
chip_gen: v6e
topology: v6e:2x2x1
jax: 0.10.0
libtpu: 0.0.40
codegen_flags: <defaults>
</compile_context>

<pallas_src>
import functools

import jax
import jax.numpy as jnp
from jax import lax
from jax.experimental import pallas as pl
from jax.experimental.pallas import tpu as pltpu

LANE = 128
SUBLANES = 8
MAX_BLOCK_ROWS = 1024   # (1024, 128) f32 = 512 KiB per buffer; 2 inputs x 2
                        # buffers = 2 MiB VMEM -> safe on v5e / v6e / v7x.
NUM_SPLITS = 2          # leading "parallel" axis -> both TensorCores on v7x.


def _round_up(x, m):
    return ((x + m - 1) // m) * m


def _trans_d_loss_kernel(stats_ref, yp_ref, yt_ref, out_ref, *, gamma, c_margin):
    """One (block_rows, 128) tile of the elementwise loss + partial reduce."""
    i = pl.program_id(1)  # reduction axis ("arbitrary", innermost)

    @pl.when(i == 0)
    def _():  # init the per-split resident accumulator block
        out_ref[...] = jnp.zeros_like(out_ref)

    ref_mean = stats_ref[0]
    inv_std = stats_ref[1]

    dev = (yp_ref[...] - ref_mean) * inv_std           # VPU (mul, not div)
    t_in = jnp.tanh(dev)                               # EUP
    inlier = lax.integer_pow(t_in, 2 * gamma)          # VPU multiplies only
    t_out = jnp.tanh(jnp.float32(c_margin) - dev)      # EUP
    outlier = t_out * t_out

    yt = yt_ref[...]
    per_elem = inlier + yt * (outlier - inlier)        # == (1-yt)*in + yt*out

    # Reduce the tile to one vreg-shaped (8, 128) partial. The reshape only
    # splits the leading dim (no (8,128)-tile crossing); the sum over axis 0 is
    # elementwise VPU adds across sublane groups — no scalar round trip, no
    # per-step loop-carried cross-lane reduce.
    br = per_elem.shape[0]
    partial = per_elem.reshape(br // SUBLANES, SUBLANES, LANE).sum(axis=0)
    out_ref[...] += partial


def trans_d_loss_binary(y_pred, y_true, key, *, gamma=2, c_margin=1.4):
    """Pallas implementation of TransDLossBinary.forward."""
    # --- glue: reference-distribution stats (matches torch.mean / torch.std) ---
    ref = 0.1 + 2.0 * jax.random.normal(key, (5000,), dtype=jnp.float32)
    ref_mean = jnp.mean(ref)
    ref_std = jnp.std(ref, ddof=1)  # torch.std is unbiased by default
    stats = jnp.stack([ref_mean, 1.0 / ref_std]).astype(jnp.float32)

    # --- glue: flatten to a lane-dense (rows, 128) slab ---
    yp = jnp.asarray(y_pred, jnp.float32).reshape(-1)
    yt = jnp.asarray(y_true, jnp.float32).reshape(-1)
    n = yp.shape[0]

    rows = -(-n // LANE)
    block_rows = min(MAX_BLOCK_ROWS,
                     _round_up(-(-rows // NUM_SPLITS), SUBLANES))
    blocks_per_split = -(-rows // (NUM_SPLITS * block_rows))
    rows_padded = NUM_SPLITS * blocks_per_split * block_rows
    pad = rows_padded * LANE - n

    if pad:
        # Pad values chosen so the padded elements contribute (numerically)
        # zero loss:
        #   y_true = 1                  -> (1 - y_true) * inlier_loss == 0
        #   y_pred = mean + c_margin*std -> dev == c_margin
        #                               -> outlier_loss = tanh(0)^2 == 0
        # so no separate validity-mask array has to be streamed from HBM.
        pad_pred = ref_mean + jnp.float32(c_margin) * ref_std
        yp = jnp.concatenate([yp, jnp.full((pad,), pad_pred, jnp.float32)])
        yt = jnp.concatenate([yt, jnp.ones((pad,), jnp.float32)])
    yp2 = yp.reshape(rows_padded, LANE)
    yt2 = yt.reshape(rows_padded, LANE)

    kernel = functools.partial(
        _trans_d_loss_kernel, gamma=int(gamma), c_margin=float(c_margin))

    tile_spec = pl.BlockSpec(
        (block_rows, LANE), lambda c, i: (c * blocks_per_split + i, 0))
    partials = pl.pallas_call(
        kernel,
        out_shape=jax.ShapeDtypeStruct((NUM_SPLITS * SUBLANES, LANE), jnp.float32),
        grid=(NUM_SPLITS, blocks_per_split),
        in_specs=[
            pl.BlockSpec(memory_space=pltpu.MemorySpace.SMEM),  # [mean, 1/std]
            tile_spec,                                          # y_pred tile
            tile_spec,                                          # y_true tile
        ],
        # One resident (8,128) accumulator block per parallel split / core.
        out_specs=pl.BlockSpec((SUBLANES, LANE), lambda c, i: (c, 0)),
        compiler_params=pltpu.CompilerParams(
            dimension_semantics=("parallel", "arbitrary")),
    )(stats, yp2, yt2)

    # Single cross-lane reduce + mean normalization outside the hot loop.
    return jnp.sum(partials) / jnp.float32(n)


def _reference_jax(y_pred, y_true, key, gamma=2, c_margin=1.4):
    ref = 0.1 + 2.0 * jax.random.normal(key, (5000,), dtype=jnp.float32)
    dev = (jnp.asarray(y_pred, jnp.float32) - jnp.mean(ref)) / jnp.std(ref, ddof=1)
    inlier = jnp.tanh(dev) ** (2 * gamma)
    outlier = jnp.tanh(c_margin - dev) ** 2
    yt = jnp.asarray(y_true, jnp.float32)
    return jnp.mean((1.0 - yt) * inlier + yt * outlier)


if __name__ == "__main__":
    root = jax.random.PRNGKey(0)
    k_pred, k_true, k_ref = jax.random.split(root, 3)

    # y_pred: anomaly scores, y_true: binary labels; NCHW-shaped like a conv head.
    x_shape = (2, 4, 16, 16)
    y_pred = jax.random.normal(k_pred, x_shape, dtype=jnp.float32)
    y_true = (jax.random.uniform(k_true, x_shape) > 0.7).astype(jnp.float32)

    loss = jax.block_until_ready(trans_d_loss_binary(y_pred, y_true, k_ref))
    ref_loss = jax.block_until_ready(_reference_jax(y_pred, y_true, k_ref))
    assert abs(float(loss) - float(ref_loss)) < 1e-5, (float(loss), float(ref_loss))

    # Second check with a shape that does not divide the tile -> exercises the
    # zero-contribution padding path.
    x_shape2 = (3, 5, 7, 11)
    y_pred2 = jax.random.normal(k_pred, x_shape2, dtype=jnp.float32)
    y_true2 = (jax.random.uniform(k_true, x_shape2) > 0.5).astype(jnp.float32)
    loss2 = jax.block_until_ready(trans_d_loss_binary(y_pred2, y_true2, k_ref))
    ref_loss2 = jax.block_until_ready(_reference_jax(y_pred2, y_true2, k_ref))
    assert abs(float(loss2) - float(ref_loss2)) < 1e-5, (float(loss2), float(ref_loss2))

    print("KERNEL_OK")
</pallas_src>

<mosaic_0001>
module attributes {stable_mosaic.version = 11 : i64} {
  func.func @_trans_d_loss_kernel(%arg0: i32, %arg1: i32, %arg2: memref<2xf32, #tpu.memory_space<smem>>, %arg3: memref<8x128xf32, #tpu.memory_space<vmem>>, %arg4: memref<8x128xf32, #tpu.memory_space<vmem>>, %arg5: memref<8x128xf32, #tpu.memory_space<vmem>>) attributes {dimension_semantics = [#tpu.dimension_semantics<parallel>, #tpu.dimension_semantics<arbitrary>], iteration_bounds = array<i64: 2, 1>, scalar_prefetch = 0 : i64, scratch_operands = 0 : i64, tpu.core_type = #tpu.core_type<tc>, window_params = [{transform_indices = @transform_0, window_bounds = array<i64: 2>}, {transform_indices = @transform_1, window_bounds = array<i64: 8, 128>}, {transform_indices = @transform_2, window_bounds = array<i64: 8, 128>}, {transform_indices = @transform_3, window_bounds = array<i64: 8, 128>}]} {
    %c0_i32 = arith.constant 0 : i32
    %0 = arith.cmpi eq, %arg1, %c0_i32 : i32
    %1 = arith.extui %0 : i1 to i32
    %c0_i32_0 = arith.constant 0 : i32
    %2 = arith.cmpi ne, %1, %c0_i32_0 : i32
    scf.if %2 {
      %cst_10 = arith.constant 0.000000e+00 : f32
      %26 = vector.broadcast %cst_10 : f32 to vector<8x128xf32>
      %c0_11 = arith.constant 0 : index
      %c0_12 = arith.constant 0 : index
      %27 = vector.load %arg5[%c0_11, %c0_12] : memref<8x128xf32, #tpu.memory_space<vmem>>, vector<8x128xf32>
      tpu.vector_store %arg5[%c0_11, %c0_12], %26 {strides = array<i32>} : memref<8x128xf32, #tpu.memory_space<vmem>>, vector<8x128xf32>,
    } else {
    }
    %c0 = arith.constant 0 : index
    %3 = memref.load %arg2[%c0] : memref<2xf32, #tpu.memory_space<smem>>
    %c1 = arith.constant 1 : index
    %4 = memref.load %arg2[%c1] : memref<2xf32, #tpu.memory_space<smem>>
    %c0_1 = arith.constant 0 : index
    %c0_2 = arith.constant 0 : index
    %5 = vector.load %arg3[%c0_1, %c0_2] : memref<8x128xf32, #tpu.memory_space<vmem>>, vector<8x128xf32>
    %6 = vector.broadcast %3 : f32 to vector<8x128xf32>
    %7 = arith.subf %5, %6 : vector<8x128xf32>
    %8 = vector.broadcast %4 : f32 to vector<8x128xf32>
    %9 = arith.mulf %7, %8 : vector<8x128xf32>
    %10 = math.tanh %9 : vector<8x128xf32>
    %11 = arith.mulf %10, %10 : vector<8x128xf32>
    %12 = arith.mulf %11, %11 : vector<8x128xf32>
    %cst = arith.constant 1.400000e+00 : f32
    %13 = vector.broadcast %cst : f32 to vector<8x128xf32>
    %14 = arith.subf %13, %9 : vector<8x128xf32>
    %15 = math.tanh %14 : vector<8x128xf32>
    %16 = arith.mulf %15, %15 : vector<8x128xf32>
    %c0_3 = arith.constant 0 : index
    %c0_4 = arith.constant 0 : index
    %17 = vector.load %arg4[%c0_3, %c0_4] : memref<8x128xf32, #tpu.memory_space<vmem>>, vector<8x128xf32>
    %18 = arith.subf %16, %12 : vector<8x128xf32>
    %19 = arith.mulf %17, %18 : vector<8x128xf32>
    %20 = arith.addf %12, %19 : vector<8x128xf32>
    %21 = vector.shape_cast %20 : vector<8x128xf32> to vector<1x8x128xf32>
    %cst_5 = arith.constant dense<0.000000e+00> : vector<8x128xf32>
    %22 = vector.multi_reduction <add>, %21, %cst_5 [0] : vector<1x8x128xf32> to vector<8x128xf32>
    %c0_6 = arith.constant 0 : index
    %c0_7 = arith.constant 0 : index
    %23 = vector.load %arg5[%c0_6, %c0_7] : memref<8x128xf32, #tpu.memory_space<vmem>>, vector<8x128xf32>
    %24 = arith.addf %23, %22 : vector<8x128xf32>
    %c0_8 = arith.constant 0 : index
    %c0_9 = arith.constant 0 : index
    %25 = vector.load %arg5[%c0_8, %c0_9] : memref<8x128xf32, #tpu.memory_space<vmem>>, vector<8x128xf32>
    tpu.vector_store %arg5[%c0_8, %c0_9], %24 {strides = array<i32>} : memref<8x128xf32, #tpu.memory_space<vmem>>, vector<8x128xf32>,
    return
  }
  func.func @transform_0(%arg0: i32, %arg1: i32) -> i32 {
    %c0_i32 = arith.constant 0 : i32
    %c0_i32_0 = arith.constant 0 : i32
    return %c0_i32 : i32
  }
  func.func @transform_1(%arg0: i32, %arg1: i32) -> (i32, i32) {
    %c1_i32 = arith.constant 1 : i32
    %0 = arith.muli %arg0, %c1_i32 : i32
    %1 = arith.addi %0, %arg1 : i32
    %c0_i32 = arith.constant 0 : i32
    %c0_i32_0 = arith.constant 0 : i32
    return %1, %c0_i32 : i32, i32
  }
  func.func @transform_2(%arg0: i32, %arg1: i32) -> (i32, i32) {
    %c1_i32 = arith.constant 1 : i32
    %0 = arith.muli %arg0, %c1_i32 : i32
    %1 = arith.addi %0, %arg1 : i32
    %c0_i32 = arith.constant 0 : i32
    %c0_i32_0 = arith.constant 0 : i32
    return %1, %c0_i32 : i32, i32
  }
  func.func @transform_3(%arg0: i32, %arg1: i32) -> (i32, i32) {
    %c0_i32 = arith.constant 0 : i32
    %c0_i32_0 = arith.constant 0 : i32
    return %arg0, %c0_i32 : i32, i32
  }
}

</mosaic_0001>

<bundles_post_ra>
// kernel: tpu_custom_call.1
= control target key start
LH: loop header
LB: loop body
LE: loop exit
PB: predicated region body
PF: predicated region fallthrough
CT: control target
= control target key end

     0   :  { %s883_s0 = inlined_call_operand.hbm [shape: f32[2], index: 0, kind: input, shape index: {}]   ;;  %s884_s1 = inlined_call_operand.hbm [shape: f32[16,128], index: 1, kind: input, shape index: {}]   ;;  %s885_s2 = inlined_call_operand.hbm [shape: f32[16,128], index: 2, kind: input, shape index: {}]   ;;  %s886_s3 = inlined_call_operand.hbm [shape: f32[16,128], index: 3, kind: output, shape index: {}]  }
   0x1   :  { %887 = sst [smem:[#allocation14_spill]] %s883_s0 }
   0x2   :  { %8 = vsyncpa [#allocation5], 0 }
   0x3   :  { %9 = vsyncpa [#allocation3], 0 }
   0x4   :  { %11 = vsyncpa [#allocation3 + $0x1], 0 }
   0x5   :  { %12 = vsyncpa [#allocation8], 0 }
   0x6   :  { %14 = vsyncpa [#allocation8 + $0x1], 0 }
   0x7   :  { %15 = vsyncpa [#allocation4], 0 }
   0x8   :  { %17 = vsyncpa [#allocation4 + $0x1], 0  ;;  %s693_s12 = smov 0   ;;  %s695_s13 = smov 0  }
   0x9   :  { %s697_s14 = smov 0   ;;  %s699_s15 = smov 0  }
   0xa   :  { %s701_s16 = smov 0   ;;  %s703_s17 = smov 0  }
   0xb LB: > { %s410_s18 = sadd.s32 4294967295, %s667_s17   ;;  %s411_s19 = sadd.s32 4294967294, %s667_s17   ;;  %s667_s17 = sphi %s703_s17, %s23_s17   ;;  %s663_s16 = sphi %s701_s16, %s902_s16   ;;  %s659_s15 = sphi %s699_s15, %s901_s15   ;;  %s655_s14 = sphi %s697_s14, %s900_s14   ;;  %s651_s13 = sphi %s695_s13, %s899_s13   ;;  %s647_s12 = sphi %s693_s12, %s898_s12  }
   0xc   : > { %p72_p0 = scmp.ne.s32.totalorder %s655_s14, %s651_s13  ;;  %p78_p1 = scmp.ne.s32.totalorder %s651_s13, %s647_s12 }
   0xd   : > { %p729_p2 = scmp.eq.s32.totalorder %s410_s18, 0  ;;  %p130_p3 = scmp.eq.s32.totalorder %s410_s18, 1 }
   0xe   : > { %p136_p4 = scmp.eq.s32.totalorder %s411_s19, 1  ;;  %p412_p5 = scmp.ge.s32.totalorder %s667_s17, 1 }
   0xf   : > { %p736_p6 = por %p729_p2, %p78_p1  ;;  %p743_p7 = por %p130_p3, %p72_p0 }
  0x10   : > { %p747_p8 = por %p136_p4, %p78_p1  ;;  %p143_p9 = scmp.lt.s32.totalorder %s667_s17, 3 }
  0x11   : > { %s65_s25 = sadd.s32 1, %s655_s14  ;;  %s35_s26 = sadd.s32 1, %s663_s16 }
  0x12   : > { %s891_s23 = scalar_select %p747_p8, 1, 0 }
  0x13   : > { %p752_p10 = pnand %p412_p5, %p143_p9  ;;  %p73_p13 = scmp.eq.s32.totalorder %s667_s17, 0 }
  0x14   : > { %p37_p3 = scmp.ge.s32.totalorder %s35_s26, 2  ;;  %p455_p5 = scmp.lt.s32.totalorder %s667_s17, 2 }
  0x15   : > { %p439_p12 = pneg %p752_p10  ;;  %p767_p4 = por %p73_p13, %p72_p0 }
  0x16   : > { %s773_s28 = sand.u32 1, %s655_s14   ;;  %s669_s29 = smov [#allocation2]  }
  0x17   : > { %p440_p1 = pnand %p439_p12, %p729_p2  ;;  %s894_s0 = sld [smem:[#allocation14_spill]] }
  0x18   : > { %s904_s26 = smov (%p37_p3, %s35_s26), 0  ;;  %s415_s5 = sshll.u32 %s773_s28, 3 }
  0x19   : > { %s62_s6 = ssub.s32 %s663_s16, %s904_s26  ;;  %s416_s7 = sshll.u32 %s663_s16, 7 }
  0x1a   : > { %p63_p0 = scmp.eq.s32.totalorder %s62_s6, 0  ;;  %s175_s10 = scalar_lea.hbm %s884_s1, %s416_s7 }
  0x1b   : > { %s169_s11 = scalar_lea.vmem [#allocation6], %s415_s5  ;;  %p794_p9 = pnand %p455_p5, %p767_p4 }
  0x1c   : > { %s177_s18 = sshll.u32 %s169_s11, 4  ;;  %s801_s6 = scalar_lea.hbm %s885_s2, %s416_s7  ;;  %s178_s18 = int_to_ptr.vmem [resolvable:$true] %s177_s18 }
  0x1d   : > { %442 = dma.hbm_to_smem (!%p440_p1), %s894_s0, 16, %s669_s29, [#allocation5]  }
  0x1e   : > { %s788_s19 = scalar_select %p63_p0, %s655_s14, %s65_s25  }
  0x1f   : > { %s166_s8 = scalar_lea.sflag [#allocation3], %s773_s28  ;;  %p525_p12 = pneg %p794_p9 }
  0x20   : > { %s536_s9 = scalar_lea.vmem %s178_s18, 128  ;;  %s670_s25 = smov [#allocation6]  }
  0x21   : > { %p537_p13 = scmp.ne.s32.totalorder %s178_s18, %s536_s9  ;;  %s541_s27 = sshll.u32 %s670_s25, 4  ;;  %s542_s27 = int_to_ptr.vmem [resolvable:$false] %s541_s27 }
  0x22   : > { %s543_s11 = scalar_lea.vmem %s542_s27, 256  ;;  %p544_p4 = scmp.lt.s32.totalorder %s178_s18, %s542_s27 }
  0x23   : > { %p539_p1 = pnand %p537_p13, %p525_p12  ;;  %p545_p5 = scmp.lt.s32.totalorder %s543_s11, %s536_s9 }
  0x25   : > { %p540_p3 = pneg %p539_p1  ;;  %p546_p0 = por %p545_p5, %p544_p4 }
  0x27   : > { %p547_p11 = pnand %p546_p0, %p540_p3 }
  0x29   : > { %550 = shalt.err (!%p547_p11)
}
  0x2a   : > { %446 = dma.hbm_to_vmem [thread:$0]  (!%p794_p9), %s175_s10, 128, %s178_s18, %s166_s8  }
  0x2b   : > { %s188_s7 = scalar_lea.vmem [#allocation7], %s415_s5  ;;  %s185_s4 = scalar_lea.sflag [#allocation8], %s773_s28 }
  0x2c   : > { %s196_s30 = sshll.u32 %s188_s7, 4  ;;  %s671_s25 = smov [#allocation7]   ;;  %s197_s30 = int_to_ptr.vmem [resolvable:$true] %s196_s30 }
  0x2d   : > { %s564_s0 = scalar_lea.vmem %s197_s30, 128  ;;  %s569_s9 = sshll.u32 %s671_s25, 4  ;;  %s570_s9 = int_to_ptr.vmem [resolvable:$false] %s569_s9 }
  0x2e   : > { %p565_p13 = scmp.ne.s32.totalorder %s197_s30, %s564_s0  ;;  %s571_s27 = scalar_lea.vmem %s570_s9, 256 }
  0x2f   : > { %p572_p11 = scmp.lt.s32.totalorder %s197_s30, %s570_s9  ;;  %p573_p3 = scmp.lt.s32.totalorder %s571_s27, %s564_s0 }
  0x30   : > { %p567_p1 = pnand %p565_p13, %p525_p12 }
  0x31   : > { %p574_p4 = por %p573_p3, %p572_p11 }
  0x32   : > { %p568_p8 = pneg %p567_p1 }
  0x34   : > { %p575_p5 = pnand %p574_p4, %p568_p8 }
  0x36   : > { %578 = shalt.err (!%p575_p5)
}
  0x37   : > { %449 = dma.hbm_to_vmem [thread:$0]  (!%p794_p9), %s801_s6, 128, %s197_s30, %s185_s4  }
  0x38   : > { %205 = sbr.rel (%p752_p10) target bundleno = 118 (0x76), region = 32 }
  0x3d   : > { %630 = dma.done.wait (%p729_p2), [#allocation5], 16  }
  0x3e   : > { %632 = vsyncadd (%p729_p2), [#allocation5], 4294967280  ;;  %s825_s28 = sand.u32 1, %s651_s13  }
  0x3f   : > { %s828_s0 = sshll.u32 %s825_s28, 3  ;;  %s212_s5 = scalar_lea.sflag [#allocation3], %s825_s28 }
  0x40   : > { %s215_s10 = scalar_lea.vmem [#allocation6], %s828_s0 }
  0x41   : > { %634 = dma.done.wait (%p736_p6), %s212_s5, 128  }
  0x42   : > { %636 = vsyncadd (%p736_p6), %s212_s5, 4294967168  ;;  %s221_s20 = scalar_lea.sflag [#allocation8], %s825_s28  ;;  %s224_s24 = scalar_lea.vmem [#allocation7], %s828_s0 }
  0x43   : > { %638 = dma.done.wait (%p736_p6), %s221_s20, 128  }
  0x44   : > { %640 = vsyncadd (%p736_p6), %s221_s20, 4294967168 }
  0x45   : > { %229 = sfence }
  0x46   : > { %s260_s18 = sld [smem:[#allocation2]]  ;;  %v262_v0 = vld [vmem:[%s215_s10] sm:$0xff]  ;;  %v273_v11 = vld [vmem:[%s224_s24] sm:$0xff]  ;;  %s426_s21 = sshll.u32 %s659_s15, 7 }
  0x47   : > { %s424_s29 = sld [smem:[#allocation2 + $0x1]]  ;;  %s252_s6 = scalar_lea.vmem [#allocation9], %s828_s0 }
  0x48   : > { %s295_s8 = sshll.u32 %s252_s6, 4  ;;  %s293_s30 = scalar_lea.hbm %s886_s3, %s426_s21  ;;  %s296_s8 = int_to_ptr.vmem [resolvable:$true] %s295_s8 }
  0x49   : > { %s282_s4 = scalar_lea.sflag [#allocation4], %s825_s28  ;;  %s579_s25 = scalar_lea.vmem %s296_s8, 128 }
  0x4a   : > { %p580_p2 = scmp.ne.s32.totalorder %s296_s8, %s579_s25  ;;  %s672_s9 = smov [#allocation9]  }
  0x4b   : > { %s583_s27 = sshll.u32 %s672_s9, 4  ;;  %s584_s27 = int_to_ptr.vmem [resolvable:$false] %s583_s27 }
  0x4c   : > { %v263_v1 = vstv %s260_s18  ;;  %p581_p6 = pnand %p580_p2, %p743_p7  ;;  %s585_s5 = scalar_lea.vmem %s584_s27, 256 }
  0x4d   : > { %v264_v2 = vsub.f32 %v262_v0, %v263_v1  ;;  %v265_v3 = vstv %s424_s29  ;;  %p586_p10 = scmp.lt.s32.totalorder %s296_s8, %s584_s27  ;;  %p587_p9 = scmp.lt.s32.totalorder %s585_s5, %s579_s25 }
  0x4e   : > { %p582_p8 = pneg %p581_p6 }
  0x4f   : > { %v266_v4 = vmul.f32 %v265_v3, %v264_v2  ;;  %p588_p12 = por %p587_p9, %p586_p10 }
  0x51   : > { %508 = vtanh.f32 %v266_v4  ;;  %v270_v5 = vsub.f32 1.4, %v266_v4  ;;  %p589_p0 = pnand %p588_p12, %p582_p8 }
  0x53   : > { %510 = vtanh.f32 %v270_v5 }
  0x5e   : > { %v509_v6 = vpop.eup %508 }
  0x5f   : > { %v268_v7 = vmul.f32 %v509_v6, %v509_v6 }
  0x60   : > { %v511_v8 = vpop.eup %510 }
  0x61   : > { %v269_v9 = vmul.f32 %v268_v7, %v268_v7  ;;  %v272_v10 = vmul.f32 %v511_v8, %v511_v8 }
  0x63   : > { %v274_v12 = vsub.f32 %v272_v10, %v269_v9 }
  0x65   : > { %v275_v13 = vmul.f32 %v274_v12, %v273_v11 }
  0x67   : > { %v276_v14 = vadd.f32 %v275_v13, %v269_v9 }
  0x69   : > { %280 = vst [vmem:[%s252_s6] sm:$0xff] %v276_v14 }
  0x6a   : > { %592 = shalt.err (!%p589_p0)
}
  0x6b   : > { %s593_s15 = scalar_lea.hbm %s293_s30, 128  ;;  %s597_s10 = scalar_lea.hbm %s886_s3, 256 }
  0x6c   : > { %p594_p13 = scmp.ne.s32.totalorder %s293_s30, %s593_s15  ;;  %p598_p3 = scmp.lt.s32.totalorder %s293_s30, %s886_s3 }
  0x6d   : > { %p599_p4 = scmp.lt.s32.totalorder %s597_s10, %s593_s15 }
  0x6e   : > { %p595_p1 = pnand %p594_p13, %p743_p7 }
  0x6f   : > { %p600_p5 = por %p599_p4, %p598_p3 }
  0x70   : > { %p596_p11 = pneg %p595_p1 }
  0x72   : > { %p601_p2 = pnand %p600_p5, %p596_p11 }
  0x74   : > { %604 = shalt.err (!%p601_p2)
}
  0x75   : > { %437 = dma.vmem_to_hbm [thread:$0]  (%p743_p7), %s296_s8, 128, %s293_s30, %s282_s4  }
  0x76 PF: > { %s307_s18 = sand.u32 1, %s647_s12   ;;  %p896_p6 = scmp.ne.s32.totalorder %s891_s23, 0 }
  0x77   : > { %p897_p8 = scmp.ge.s32.totalorder %s667_s17, 2  ;;  %s308_s29 = scalar_lea.sflag [#allocation4], %s307_s18 }
  0x79   : > { %p451_p10 = pnand %p897_p8, %p896_p6 }
  0x7b   : > { %p452_p9 = pneg %p451_p10 }
  0x7d   : > { %642 = dma.done.wait (%p452_p9), %s308_s29, 128  }
  0x7e   : > { %644 = vsyncadd (%p452_p9), %s308_s29, 4294967168  ;;  %s23_s17 = sadd.s32 1, %s667_s17   ;;  %s898_s12 = smov %s651_s13 }
  0x7f   : > { %p20_p12 = scmp.ge.s32.totalorder %s23_s17, 4   ;;  %s899_s13 = smov %s655_s14 }
  0x80   : > { %s900_s14 = smov %s788_s19  ;;  %s901_s15 = smov %s663_s16 }
  0x81   : > { %s902_s16 = smov %s904_s26  ;;  %22 = sbr.rel (!%p20_p12) target bundleno = 11 (0xb), region = 99 }
  0x86   :  { %313 = vsyncpa [#allocation3], 1 }
  0x87   :  { %315 = vsyncpa [#allocation3 + $0x1], 1 }
  0x88   :  { %316 = vsyncpa [#allocation8], 1 }
  0x89   :  { %318 = vsyncpa [#allocation8 + $0x1], 1 }
  0x8a   :  { %319 = vsyncpa [#allocation4], 1 }
  0x8b   :  { %321 = vsyncpa [#allocation4 + $0x1], 1 }
  0x8c   :  { %322 = vsyncpa [#allocation5], 1 }
  0x8d   :  { %324 = vsyncpa [#allocation5 + $0x1], 1 }

</bundles_post_ra>
